<compile_context>
chip_gen: v6e
topology: v6e:2x2x1
jax: 0.10.0
libtpu: 0.0.40
codegen_flags: <defaults>
</compile_context>

<pallas_src>
import jax
import jax.numpy as jnp
from jax.experimental import pallas as pl
from jax.experimental.pallas import tpu as pltpu


def _round_up(x: int, m: int) -> int:
    return ((x + m - 1) // m) * m


def _pad2d(a, rows: int, cols: int, dtype):
    """Zero-pad a 2-D array to (rows, cols) and cast to dtype."""
    out = jnp.zeros((rows, cols), dtype)
    return out.at[: a.shape[0], : a.shape[1]].set(a.astype(dtype))


def dqn_kernel(x_ref, w1_ref, b1_ref, w2_ref, b2_ref, w3_ref, b3_ref, o_ref):
    # fc1 + ReLU   (bf16 MXU operands, f32 accumulation)
    h1 = jnp.dot(x_ref[...], w1_ref[...], preferred_element_type=jnp.float32)
    h1 = jnp.maximum(h1 + b1_ref[...], 0.0).astype(jnp.bfloat16)
    # fc2 + ReLU
    h2 = jnp.dot(h1, w2_ref[...], preferred_element_type=jnp.float32)
    h2 = jnp.maximum(h2 + b2_ref[...], 0.0).astype(jnp.bfloat16)
    # fc3 + sigmoid: 1 / (1 + exp(-z)), divide pushed to the EUP slot.
    z = jnp.dot(h2, w3_ref[...], preferred_element_type=jnp.float32) + b3_ref[...]
    o_ref[...] = pl.reciprocal(1.0 + jnp.exp(-z), approx=True)


def prepare_params(w1, b1, w2, b2, w3, b3):
    """One-time lane-dense (128) padding + bf16 cast of the parameters.

    Hoisted out of dqn_forward so repeated forward calls pay zero param
    pad/cast HBM traffic.  Zero padding is semantics-preserving.
    """
    in_f, hid = w1.shape
    out_f = w3.shape[1]
    in_p, hid_p, out_p = (_round_up(d, 128) for d in (in_f, hid, out_f))
    return {
        "w1": _pad2d(w1, in_p, hid_p, jnp.bfloat16),
        "b1": _pad2d(b1, 1, hid_p, jnp.float32),
        "w2": _pad2d(w2, hid_p, hid_p, jnp.bfloat16),
        "b2": _pad2d(b2, 1, hid_p, jnp.float32),
        "w3": _pad2d(w3, hid_p, out_p, jnp.bfloat16),
        "b3": _pad2d(b3, 1, out_p, jnp.float32),
        "in_features": in_f,
        "out_features": out_f,
    }


def dqn_forward(x, params, *, tile_b: int = 512, num_cores: int = 1):
    """Pallas forward pass.

    x: (batch, in) float array.  params: output of prepare_params().
    num_cores > 1 (e.g. 2 on v7x) guarantees >= num_cores batch tiles so the
    'parallel' grid axis actually shards across TensorCores.
    """
    batch, in_features = x.shape
    assert in_features == params["in_features"]
    out_features = params["out_features"]
    w1p, b1p = params["w1"], params["b1"]
    w2p, b2p = params["w2"], params["b2"]
    w3p, b3p = params["w3"], params["b3"]
    in_p, out_p = w1p.shape[0], w3p.shape[1]

    # Pad batch only to the 8-row sublane granule (no over-padding to a
    # multiple of tile_b); the last partial tile is masked by Pallas.
    batch_p = _round_up(batch, 8)
    tile_b = max(8, min(_round_up(tile_b, 8), batch_p))
    if num_cores > 1 and batch_p >= 2 * 8:
        tile_b = min(tile_b, _round_up(pl.cdiv(batch_p, num_cores), 8))
    n_tiles = pl.cdiv(batch_p, tile_b)

    # x streamed as bf16; skip the pad copy when already aligned.
    if batch == batch_p and in_features == in_p:
        xp = x.astype(jnp.bfloat16)
    else:
        xp = _pad2d(x, batch_p, in_p, jnp.bfloat16)

    x_spec = pl.BlockSpec((tile_b, in_p), lambda i: (i, 0))
    o_spec = pl.BlockSpec((tile_b, out_p), lambda i: (i, 0))

    def run(single_buffer_weights: bool):
        def resident(shape):
            # Block index never changes across the batch grid -> stays
            # VMEM-resident; single-buffer it when supported.
            if single_buffer_weights:
                return pl.BlockSpec(shape, lambda i: (0, 0),
                                    pipeline_mode=pl.Buffered(1))
            return pl.BlockSpec(shape, lambda i: (0, 0))

        return pl.pallas_call(
            dqn_kernel,
            out_shape=jax.ShapeDtypeStruct((batch_p, out_p), jnp.float32),
            grid=(n_tiles,),
            in_specs=[x_spec,
                      resident(w1p.shape), resident(b1p.shape),
                      resident(w2p.shape), resident(b2p.shape),
                      resident(w3p.shape), resident(b3p.shape)],
            out_specs=o_spec,
            compiler_params=pltpu.CompilerParams(
                dimension_semantics=("parallel",)),
        )(xp, w1p, b1p, w2p, b2p, w3p, b3p)

    try:
        out_padded = run(single_buffer_weights=True)
    except Exception:
        # pipeline_mode / Buffered(1) not supported by this JAX build:
        # fall back to default double-buffered resident operands.
        out_padded = run(single_buffer_weights=False)

    return out_padded[:batch, :out_features]


def init_params(key, input_size, hidden_size, output_size):
    """Deterministic init mirroring the PyTorch module's shapes.

    PyTorch nn.Linear(in, out) has weight (out, in) and bias (out,);
    we store the weight transposed as (in, out) and bias as (1, out).
    """
    keys = jax.random.split(key, 6)

    def linear(kw, kb, fan_in, fan_out):
        bound = 1.0 / jnp.sqrt(fan_in)
        w = jax.random.uniform(kw, (fan_in, fan_out), jnp.float32, -bound, bound)
        b = jax.random.uniform(kb, (1, fan_out), jnp.float32, -bound, bound)
        return w, b

    w1, b1 = linear(keys[0], keys[1], input_size, hidden_size)
    w2, b2 = linear(keys[2], keys[3], hidden_size, hidden_size)
    w3, b3 = linear(keys[4], keys[5], hidden_size, output_size)
    return w1, b1, w2, b2, w3, b3


def reference_forward(x, w1, b1, w2, b2, w3, b3):
    h1 = jax.nn.relu(x @ w1 + b1)
    h2 = jax.nn.relu(h1 @ w2 + b2)
    return jax.nn.sigmoid(h2 @ w3 + b3)


if __name__ == "__main__":
    batch, input_size, hidden_size, output_size = 2, 16, 32, 8

    key = jax.random.PRNGKey(0)
    kx, kp = jax.random.split(key)
    x = jax.random.normal(kx, (batch, input_size), jnp.float32)
    raw_params = init_params(kp, input_size, hidden_size, output_size)

    # One-time param padding / bf16 cast (hoisted out of the forward path).
    params = prepare_params(*raw_params)

    out = dqn_forward(x, params)
    out = jax.block_until_ready(out)

    ref = reference_forward(x, *raw_params)
    assert out.shape == (batch, output_size)
    # Tolerance loosened for bf16 MXU operands (f32 accumulation) + approx recip.
    assert jnp.allclose(out, ref, atol=3e-2, rtol=3e-2), "mismatch vs reference"

    print("KERNEL_OK")
</pallas_src>

<mosaic_0001>
module attributes {stable_mosaic.version = 11 : i64} {
  func.func @dqn_kernel(%arg0: i32, %arg1: memref<8x128xbf16, #tpu.memory_space<vmem>>, %arg2: memref<128x128xbf16, #tpu.memory_space<vmem>>, %arg3: memref<1x128xf32, #tpu.memory_space<vmem>>, %arg4: memref<128x128xbf16, #tpu.memory_space<vmem>>, %arg5: memref<1x128xf32, #tpu.memory_space<vmem>>, %arg6: memref<128x128xbf16, #tpu.memory_space<vmem>>, %arg7: memref<1x128xf32, #tpu.memory_space<vmem>>, %arg8: memref<8x128xf32, #tpu.memory_space<vmem>>) attributes {dimension_semantics = [#tpu.dimension_semantics<parallel>], iteration_bounds = array<i64: 1>, scalar_prefetch = 0 : i64, scratch_operands = 0 : i64, tpu.core_type = #tpu.core_type<tc>, window_params = [{transform_indices = @transform_0, window_bounds = array<i64: 8, 128>}, {pipeline_mode = #tpu.pipeline_mode<synchronous>, transform_indices = @transform_1, window_bounds = array<i64: 128, 128>}, {pipeline_mode = #tpu.pipeline_mode<synchronous>, transform_indices = @transform_2, window_bounds = array<i64: 1, 128>}, {pipeline_mode = #tpu.pipeline_mode<synchronous>, transform_indices = @transform_3, window_bounds = array<i64: 128, 128>}, {pipeline_mode = #tpu.pipeline_mode<synchronous>, transform_indices = @transform_4, window_bounds = array<i64: 1, 128>}, {pipeline_mode = #tpu.pipeline_mode<synchronous>, transform_indices = @transform_5, window_bounds = array<i64: 128, 128>}, {pipeline_mode = #tpu.pipeline_mode<synchronous>, transform_indices = @transform_6, window_bounds = array<i64: 1, 128>}, {transform_indices = @transform_7, window_bounds = array<i64: 8, 128>}]} {
    %c0 = arith.constant 0 : index
    %c0_0 = arith.constant 0 : index
    %0 = vector.load %arg1[%c0, %c0_0] : memref<8x128xbf16, #tpu.memory_space<vmem>>, vector<8x128xbf16>
    %c0_1 = arith.constant 0 : index
    %c0_2 = arith.constant 0 : index
    %1 = vector.load %arg2[%c0_1, %c0_2] : memref<128x128xbf16, #tpu.memory_space<vmem>>, vector<128x128xbf16>
    %cst = arith.constant dense<0.000000e+00> : vector<8x128xf32>
    %2 = tpu.matmul %0, %1, %cst {dimension_numbers = #tpu.dot_dimension_numbers<[1], [0], [0], [1], [0, 0, 1, 1], [], []>} : vector<8x128xbf16>, vector<128x128xbf16>, vector<8x128xf32> -> vector<8x128xf32>
    %c0_3 = arith.constant 0 : index
    %c0_4 = arith.constant 0 : index
    %3 = vector.load %arg3[%c0_3, %c0_4] : memref<1x128xf32, #tpu.memory_space<vmem>>, vector<1x128xf32>
    %4 = vector.broadcast %3 : vector<1x128xf32> to vector<8x128xf32>
    %5 = arith.addf %2, %4 : vector<8x128xf32>
    %cst_5 = arith.constant 0.000000e+00 : f32
    %6 = vector.broadcast %cst_5 : f32 to vector<8x128xf32>
    %7 = arith.maximumf %5, %6 : vector<8x128xf32>
    %8 = arith.truncf %7 : vector<8x128xf32> to vector<8x128xbf16>
    %c0_6 = arith.constant 0 : index
    %c0_7 = arith.constant 0 : index
    %9 = vector.load %arg4[%c0_6, %c0_7] : memref<128x128xbf16, #tpu.memory_space<vmem>>, vector<128x128xbf16>
    %cst_8 = arith.constant dense<0.000000e+00> : vector<8x128xf32>
    %10 = tpu.matmul %8, %9, %cst_8 {dimension_numbers = #tpu.dot_dimension_numbers<[1], [0], [0], [1], [0, 0, 1, 1], [], []>} : vector<8x128xbf16>, vector<128x128xbf16>, vector<8x128xf32> -> vector<8x128xf32>
    %c0_9 = arith.constant 0 : index
    %c0_10 = arith.constant 0 : index
    %11 = vector.load %arg5[%c0_9, %c0_10] : memref<1x128xf32, #tpu.memory_space<vmem>>, vector<1x128xf32>
    %12 = vector.broadcast %11 : vector<1x128xf32> to vector<8x128xf32>
    %13 = arith.addf %10, %12 : vector<8x128xf32>
    %cst_11 = arith.constant 0.000000e+00 : f32
    %14 = vector.broadcast %cst_11 : f32 to vector<8x128xf32>
    %15 = arith.maximumf %13, %14 : vector<8x128xf32>
    %16 = arith.truncf %15 : vector<8x128xf32> to vector<8x128xbf16>
    %c0_12 = arith.constant 0 : index
    %c0_13 = arith.constant 0 : index
    %17 = vector.load %arg6[%c0_12, %c0_13] : memref<128x128xbf16, #tpu.memory_space<vmem>>, vector<128x128xbf16>
    %cst_14 = arith.constant dense<0.000000e+00> : vector<8x128xf32>
    %18 = tpu.matmul %16, %17, %cst_14 {dimension_numbers = #tpu.dot_dimension_numbers<[1], [0], [0], [1], [0, 0, 1, 1], [], []>} : vector<8x128xbf16>, vector<128x128xbf16>, vector<8x128xf32> -> vector<8x128xf32>
    %c0_15 = arith.constant 0 : index
    %c0_16 = arith.constant 0 : index
    %19 = vector.load %arg7[%c0_15, %c0_16] : memref<1x128xf32, #tpu.memory_space<vmem>>, vector<1x128xf32>
    %20 = vector.broadcast %19 : vector<1x128xf32> to vector<8x128xf32>
    %21 = arith.addf %18, %20 : vector<8x128xf32>
    %cst_17 = arith.constant 0.000000e+00 : f32
    %22 = vector.broadcast %cst_17 : f32 to vector<8x128xf32>
    %23 = arith.subf %22, %21 : vector<8x128xf32>
    %24 = math.exp %23 : vector<8x128xf32>
    %cst_18 = arith.constant 1.000000e+00 : f32
    %25 = vector.broadcast %cst_18 : f32 to vector<8x128xf32>
    %26 = arith.addf %25, %24 : vector<8x128xf32>
    %27 = tpu.reciprocal %26 {approx = true} : vector<8x128xf32> -> vector<8x128xf32>
    %c0_19 = arith.constant 0 : index
    %c0_20 = arith.constant 0 : index
    %28 = vector.load %arg8[%c0_19, %c0_20] : memref<8x128xf32, #tpu.memory_space<vmem>>, vector<8x128xf32>
    tpu.vector_store %arg8[%c0_19, %c0_20], %27 {strides = array<i32>} : memref<8x128xf32, #tpu.memory_space<vmem>>, vector<8x128xf32>,
    return
  }
  func.func @transform_0(%arg0: i32) -> (i32, i32) {
    %c0_i32 = arith.constant 0 : i32
    %c0_i32_0 = arith.constant 0 : i32
    return %arg0, %c0_i32 : i32, i32
  }
  func.func @transform_1(%arg0: i32) -> (i32, i32) {
    %c0_i32 = arith.constant 0 : i32
    %c0_i32_0 = arith.constant 0 : i32
    %c0_i32_1 = arith.constant 0 : i32
    return %c0_i32, %c0_i32_0 : i32, i32
  }
  func.func @transform_2(%arg0: i32) -> (i32, i32) {
    %c0_i32 = arith.constant 0 : i32
    %c0_i32_0 = arith.constant 0 : i32
    %c0_i32_1 = arith.constant 0 : i32
    return %c0_i32, %c0_i32_0 : i32, i32
  }
  func.func @transform_3(%arg0: i32) -> (i32, i32) {
    %c0_i32 = arith.constant 0 : i32
    %c0_i32_0 = arith.constant 0 : i32
    %c0_i32_1 = arith.constant 0 : i32
    return %c0_i32, %c0_i32_0 : i32, i32
  }
  func.func @transform_4(%arg0: i32) -> (i32, i32) {
    %c0_i32 = arith.constant 0 : i32
    %c0_i32_0 = arith.constant 0 : i32
    %c0_i32_1 = arith.constant 0 : i32
    return %c0_i32, %c0_i32_0 : i32, i32
  }
  func.func @transform_5(%arg0: i32) -> (i32, i32) {
    %c0_i32 = arith.constant 0 : i32
    %c0_i32_0 = arith.constant 0 : i32
    %c0_i32_1 = arith.constant 0 : i32
    return %c0_i32, %c0_i32_0 : i32, i32
  }
  func.func @transform_6(%arg0: i32) -> (i32, i32) {
    %c0_i32 = arith.constant 0 : i32
    %c0_i32_0 = arith.constant 0 : i32
    %c0_i32_1 = arith.constant 0 : i32
    return %c0_i32, %c0_i32_0 : i32, i32
  }
  func.func @transform_7(%arg0: i32) -> (i32, i32) {
    %c0_i32 = arith.constant 0 : i32
    %c0_i32_0 = arith.constant 0 : i32
    return %arg0, %c0_i32 : i32, i32
  }
}

module attributes {stable_mosaic.version = 11 : i64} {
  func.func @dqn_kernel(%arg0: i32, %arg1: memref<8x128xbf16, #tpu.memory_space<vmem>>, %arg2: memref<128x128xbf16, #tpu.memory_space<vmem>>, %arg3: memref<1x128xf32, #tpu.memory_space<vmem>>, %arg4: memref<128x128xbf16, #tpu.memory_space<vmem>>, %arg5: memref<1x128xf32, #tpu.memory_space<vmem>>, %arg6: memref<128x128xbf16, #tpu.memory_space<vmem>>, %arg7: memref<1x128xf32, #tpu.memory_space<vmem>>, %arg8: memref<8x128xf32, #tpu.memory_space<vmem>>) attributes {dimension_semantics = [#tpu.dimension_semantics<parallel>], iteration_bounds = array<i64: 1>, scalar_prefetch = 0 : i64, scratch_operands = 0 : i64, tpu.core_type = #tpu.core_type<tc>, window_params = [{transform_indices = @transform_0, window_bounds = array<i64: 8, 128>}, {pipeline_mode = #tpu.pipeline_mode<synchronous>, transform_indices = @transform_1, window_bounds = array<i64: 128, 128>}, {pipeline_mode = #tpu.pipeline_mode<synchronous>, transform_indices = @transform_2, window_bounds = array<i64: 1, 128>}, {pipeline_mode = #tpu.pipeline_mode<synchronous>, transform_indices = @transform_3, window_bounds = array<i64: 128, 128>}, {pipeline_mode = #tpu.pipeline_mode<synchronous>, transform_indices = @transform_4, window_bounds = array<i64: 1, 128>}, {pipeline_mode = #tpu.pipeline_mode<synchronous>, transform_indices = @transform_5, window_bounds = array<i64: 128, 128>}, {pipeline_mode = #tpu.pipeline_mode<synchronous>, transform_indices = @transform_6, window_bounds = array<i64: 1, 128>}, {transform_indices = @transform_7, window_bounds = array<i64: 8, 128>}]} {
    %c0 = arith.constant 0 : index
    %c0_0 = arith.constant 0 : index
    %0 = vector.load %arg1[%c0, %c0_0] : memref<8x128xbf16, #tpu.memory_space<vmem>>, vector<8x128xbf16>
    %c0_1 = arith.constant 0 : index
    %c0_2 = arith.constant 0 : index
    %1 = vector.load %arg2[%c0_1, %c0_2] : memref<128x128xbf16, #tpu.memory_space<vmem>>, vector<128x128xbf16>
    %cst = arith.constant dense<0.000000e+00> : vector<8x128xf32>
    %2 = tpu.matmul %0, %1, %cst {dimension_numbers = #tpu.dot_dimension_numbers<[1], [0], [0], [1], [0, 0, 1, 1], [], []>} : vector<8x128xbf16>, vector<128x128xbf16>, vector<8x128xf32> -> vector<8x128xf32>
    %c0_3 = arith.constant 0 : index
    %c0_4 = arith.constant 0 : index
    %3 = vector.load %arg3[%c0_3, %c0_4] : memref<1x128xf32, #tpu.memory_space<vmem>>, vector<1x128xf32>
    %4 = vector.broadcast %3 : vector<1x128xf32> to vector<8x128xf32>
    %5 = arith.addf %2, %4 : vector<8x128xf32>
    %cst_5 = arith.constant 0.000000e+00 : f32
    %6 = vector.broadcast %cst_5 : f32 to vector<8x128xf32>
    %7 = arith.maximumf %5, %6 : vector<8x128xf32>
    %8 = arith.truncf %7 : vector<8x128xf32> to vector<8x128xbf16>
    %c0_6 = arith.constant 0 : index
    %c0_7 = arith.constant 0 : index
    %9 = vector.load %arg4[%c0_6, %c0_7] : memref<128x128xbf16, #tpu.memory_space<vmem>>, vector<128x128xbf16>
    %cst_8 = arith.constant dense<0.000000e+00> : vector<8x128xf32>
    %10 = tpu.matmul %8, %9, %cst_8 {dimension_numbers = #tpu.dot_dimension_numbers<[1], [0], [0], [1], [0, 0, 1, 1], [], []>} : vector<8x128xbf16>, vector<128x128xbf16>, vector<8x128xf32> -> vector<8x128xf32>
    %c0_9 = arith.constant 0 : index
    %c0_10 = arith.constant 0 : index
    %11 = vector.load %arg5[%c0_9, %c0_10] : memref<1x128xf32, #tpu.memory_space<vmem>>, vector<1x128xf32>
    %12 = vector.broadcast %11 : vector<1x128xf32> to vector<8x128xf32>
    %13 = arith.addf %10, %12 : vector<8x128xf32>
    %cst_11 = arith.constant 0.000000e+00 : f32
    %14 = vector.broadcast %cst_11 : f32 to vector<8x128xf32>
    %15 = arith.maximumf %13, %14 : vector<8x128xf32>
    %16 = arith.truncf %15 : vector<8x128xf32> to vector<8x128xbf16>
    %c0_12 = arith.constant 0 : index
    %c0_13 = arith.constant 0 : index
    %17 = vector.load %arg6[%c0_12, %c0_13] : memref<128x128xbf16, #tpu.memory_space<vmem>>, vector<128x128xbf16>
    %cst_14 = arith.constant dense<0.000000e+00> : vector<8x128xf32>
    %18 = tpu.matmul %16, %17, %cst_14 {dimension_numbers = #tpu.dot_dimension_numbers<[1], [0], [0], [1], [0, 0, 1, 1], [], []>} : vector<8x128xbf16>, vector<128x128xbf16>, vector<8x128xf32> -> vector<8x128xf32>
    %c0_15 = arith.constant 0 : index
    %c0_16 = arith.constant 0 : index
    %19 = vector.load %arg7[%c0_15, %c0_16] : memref<1x128xf32, #tpu.memory_space<vmem>>, vector<1x128xf32>
    %20 = vector.broadcast %19 : vector<1x128xf32> to vector<8x128xf32>
    %21 = arith.addf %18, %20 : vector<8x128xf32>
    %cst_17 = arith.constant 0.000000e+00 : f32
    %22 = vector.broadcast %cst_17 : f32 to vector<8x128xf32>
    %23 = arith.subf %22, %21 : vector<8x128xf32>
    %24 = math.exp %23 : vector<8x128xf32>
    %cst_18 = arith.constant 1.000000e+00 : f32
    %25 = vector.broadcast %cst_18 : f32 to vector<8x128xf32>
    %26 = arith.addf %25, %24 : vector<8x128xf32>
    %27 = tpu.reciprocal %26 {approx = true} : vector<8x128xf32> -> vector<8x128xf32>
    %c0_19 = arith.constant 0 : index
    %c0_20 = arith.constant 0 : index
    %28 = vector.load %arg8[%c0_19, %c0_20] : memref<8x128xf32, #tpu.memory_space<vmem>>, vector<8x128xf32>
    tpu.vector_store %arg8[%c0_19, %c0_20], %27 {strides = array<i32>} : memref<8x128xf32, #tpu.memory_space<vmem>>, vector<8x128xf32>,
    return
  }
  func.func @transform_0(%arg0: i32) -> (i32, i32) {
    %c0_i32 = arith.constant 0 : i32
    %c0_i32_0 = arith.constant 0 : i32
    return %arg0, %c0_i32 : i32, i32
  }
  func.func @transform_1(%arg0: i32) -> (i32, i32) {
    %c0_i32 = arith.constant 0 : i32
    %c0_i32_0 = arith.constant 0 : i32
    %c0_i32_1 = arith.constant 0 : i32
    return %c0_i32, %c0_i32_0 : i32, i32
  }
  func.func @transform_2(%arg0: i32) -> (i32, i32) {
    %c0_i32 = arith.constant 0 : i32
    %c0_i32_0 = arith.constant 0 : i32
    %c0_i32_1 = arith.constant 0 : i32
    return %c0_i32, %c0_i32_0 : i32, i32
  }
  func.func @transform_3(%arg0: i32) -> (i32, i32) {
    %c0_i32 = arith.constant 0 : i32
    %c0_i32_0 = arith.constant 0 : i32
    %c0_i32_1 = arith.constant 0 : i32
    return %c0_i32, %c0_i32_0 : i32, i32
  }
  func.func @transform_4(%arg0: i32) -> (i32, i32) {
    %c0_i32 = arith.constant 0 : i32
    %c0_i32_0 = arith.constant 0 : i32
    %c0_i32_1 = arith.constant 0 : i32
    return %c0_i32, %c0_i32_0 : i32, i32
  }
  func.func @transform_5(%arg0: i32) -> (i32, i32) {
    %c0_i32 = arith.constant 0 : i32
    %c0_i32_0 = arith.constant 0 : i32
    %c0_i32_1 = arith.constant 0 : i32
    return %c0_i32, %c0_i32_0 : i32, i32
  }
  func.func @transform_6(%arg0: i32) -> (i32, i32) {
    %c0_i32 = arith.constant 0 : i32
    %c0_i32_0 = arith.constant 0 : i32
    %c0_i32_1 = arith.constant 0 : i32
    return %c0_i32, %c0_i32_0 : i32, i32
  }
  func.func @transform_7(%arg0: i32) -> (i32, i32) {
    %c0_i32 = arith.constant 0 : i32
    %c0_i32_0 = arith.constant 0 : i32
    return %arg0, %c0_i32 : i32, i32
  }
}

</mosaic_0001>

<bundles_post_ra>
// kernel: tpu_custom_call.1
= control target key start
LH: loop header
LB: loop body
LE: loop exit
PB: predicated region body
PF: predicated region fallthrough
CT: control target
= control target key end

     0   :  { %12 = vsyncpa [#allocation3], 0  ;;  %s813_s0 = inlined_call_operand.hbm [shape: bf16[8,128], index: 0, kind: input, shape index: {}]   ;;  %s814_s1 = inlined_call_operand.hbm [shape: bf16[128,128], index: 1, kind: input, shape index: {}]   ;;  %s815_s2 = inlined_call_operand.vmem [shape: f32[1,128], index: 2, kind: input, shape index: {}]   ;;  %s816_s3 = inlined_call_operand.hbm [shape: bf16[128,128], index: 3, kind: input, shape index: {}]   ;;  %s817_s4 = inlined_call_operand.vmem [shape: f32[1,128], index: 4, kind: input, shape index: {}]   ;;  %s818_s5 = inlined_call_operand.hbm [shape: bf16[128,128], index: 5, kind: input, shape index: {}]   ;;  %s819_s6 = inlined_call_operand.vmem [shape: f32[1,128], index: 6, kind: input, shape index: {}]   ;;  %s820_s7 = inlined_call_operand.hbm [shape: f32[8,128], index: 7, kind: output, shape index: {}]  }
   0x1   :  { %13 = vsyncpa [#allocation6], 0 }
   0x2   :  { %14 = vsyncpa [#allocation9], 0 }
   0x3   :  { %15 = vsyncpa [#allocation4], 0  ;;  %s701_s24 = smov [#allocation5]  }
   0x4   :  { %s31_s25 = sshll.u32 %s701_s24, 4  ;;  %s32_s25 = int_to_ptr.vmem [resolvable:$true] %s31_s25 }
   0x5   :  { %s601_s26 = scalar_lea.vmem %s32_s25, 1024  ;;  %p606_p1 = scmp.lt.s32.totalorder %s32_s25, %s32_s25 }
   0x6   :  { %p602_p0 = scmp.ne.s32.totalorder %s32_s25, %s601_s26  ;;  %p607_p2 = scmp.lt.s32.totalorder %s601_s26, %s601_s26 }
   0x8   :  { %p608_p3 = por %p607_p2, %p606_p1 }
   0xa   :  { %p609_p4 = pnand %p608_p3, %p602_p0 }
   0xc   :  { %612 = shalt.err (!%p609_p4)
}
   0xd   :  { %s702_s27 = smov 64   ;;  %s703_s28 = smov 4  }
   0xe   :  { %37 = dma.hbm_to_vmem [thread:$0]  %s814_s1, 1024, %s32_s25, [#allocation6], %s702_s27, %s702_s27, %s703_s28  }
   0xf   :  { %s704_s8 = smov [#allocation2]   ;;  %s705_s10 = smov [#allocation7]  }
  0x10   :  { %s22_s9 = sshll.u32 %s704_s8, 4  ;;  %s45_s11 = sshll.u32 %s705_s10, 4  ;;  %s23_s9 = int_to_ptr.vmem [resolvable:$true] %s22_s9  ;;  %s46_s11 = int_to_ptr.vmem [resolvable:$true] %s45_s11 }
  0x11   :  { %s621_s12 = scalar_lea.vmem %s23_s9, 64  ;;  %p626_p6 = scmp.lt.s32.totalorder %s23_s9, %s23_s9 }
  0x12   :  { %p622_p5 = scmp.ne.s32.totalorder %s23_s9, %s621_s12  ;;  %p627_p7 = scmp.lt.s32.totalorder %s621_s12, %s621_s12 }
  0x14   :  { %p628_p8 = por %p627_p7, %p626_p6 }
  0x16   :  { %p629_p9 = pnand %p628_p8, %p622_p5 }
  0x18   :  { %632 = shalt.err (!%p629_p9)
}
  0x19   :  { %25 = dma.hbm_to_vmem [thread:$0]  %s813_s0, 64, %s23_s9, [#allocation3]  }
  0x1a   :  { %s641_s15 = scalar_lea.vmem %s46_s11, 1024  ;;  %p646_p11 = scmp.lt.s32.totalorder %s46_s11, %s46_s11 }
  0x1b   :  { %p642_p10 = scmp.ne.s32.totalorder %s46_s11, %s641_s15  ;;  %p647_p12 = scmp.lt.s32.totalorder %s641_s15, %s641_s15 }
  0x1d   :  { %p648_p13 = por %p647_p12, %p646_p11 }
  0x1f   :  { %p649_p0 = pnand %p648_p13, %p642_p10 }
  0x21   :  { %652 = shalt.err (!%p649_p0)
}
  0x22   :  { %51 = dma.hbm_to_vmem [thread:$0]  %s816_s3, 1024, %s46_s11, [#allocation6], %s702_s27, %s702_s27, %s703_s28  }
  0x23   :  { %s706_s17 = smov [#allocation8]  }
  0x24   :  { %s59_s18 = sshll.u32 %s706_s17, 4  ;;  %s60_s18 = int_to_ptr.vmem [resolvable:$true] %s59_s18 }
  0x25   :  { %s661_s19 = scalar_lea.vmem %s60_s18, 1024  ;;  %p666_p2 = scmp.lt.s32.totalorder %s60_s18, %s60_s18 }
  0x26   :  { %p662_p1 = scmp.ne.s32.totalorder %s60_s18, %s661_s19  ;;  %p667_p3 = scmp.lt.s32.totalorder %s661_s19, %s661_s19 }
  0x28   :  { %p668_p4 = por %p667_p3, %p666_p2 }
  0x2a   :  { %p669_p5 = pnand %p668_p4, %p662_p1 }
  0x2c   :  { %672 = shalt.err (!%p669_p5)
}
  0x2d   :  { %65 = dma.hbm_to_vmem [thread:$0]  %s818_s5, 1024, %s60_s18, [#allocation9], %s702_s27, %s702_s27, %s703_s28  }
  0x2e   :  { %693 = dma.done.wait [#allocation3], 64  }
  0x2f   :  { %694 = vsyncadd [#allocation3], 4294967232 }
  0x30   :  { %695 = dma.done.wait [#allocation6], 2048  }
  0x31   :  { %696 = vsyncadd [#allocation6], 4294965248 }
  0x32   :  { %697 = dma.done.wait [#allocation9], 1024  }
  0x33   :  { %698 = vsyncadd [#allocation9], 4294966272  ;;  %v707_v0 = vmov 0.0   ;;  %vm708_vm0 = vmmov 0   ;;  %v565_v1 = vld [vmem:[#allocation5 + $0x38] sm:$0xff]   ;;  %v566_v2 = vld [vmem:[#allocation5 + $0x30] sm:$0xff]  }
  0x34   :  { %496 = vmatprep.subr.bf16.mxu0 %v707_v0  ;;  %512 = vmatprep.mubr.msk.bf16.mxu0 %vm708_vm0, %v707_v0  ;;  %v567_v3 = vld [vmem:[#allocation5 + $0x28] sm:$0xff]   ;;  %v573_v4 = vld [vmem:[#allocation7 + $0x38] sm:$0xff]   ;;  %v568_v5 = vld [vmem:[#allocation5 + $0x20] sm:$0xff]  }
  0x35   :  { %516 = vmatprep.subr.bf16.mxu1 %v707_v0  ;;  %532 = vmatprep.mubr.msk.bf16.mxu1 %vm708_vm0, %v707_v0  ;;  %v574_v6 = vld [vmem:[#allocation7 + $0x30] sm:$0xff]   ;;  %v569_v7 = vld [vmem:[#allocation5 + $0x18] sm:$0xff]   ;;  %v575_v8 = vld [vmem:[#allocation7 + $0x28] sm:$0xff]  }
  0x36   :  { %497 = vmatpush3.bf16.msra.mxu0 %v565_v1  ;;  %517 = vmatpush3.bf16.msra.mxu1 %v573_v4  ;;  %v570_v9 = vld [vmem:[#allocation5 + $0x10] sm:$0xff]   ;;  %v576_v10 = vld [vmem:[#allocation7 + $0x20] sm:$0xff]   ;;  %v571_v11 = vld [vmem:[#allocation5 + $0x8] sm:$0xff]  }
  0x37   :  { %498 = vmatprep.subr.bf16.mxu0 %v707_v0  ;;  %518 = vmatprep.subr.bf16.mxu1 %v707_v0  ;;  %v577_v12 = vld [vmem:[#allocation7 + $0x18] sm:$0xff]   ;;  %v572_v13 = vld [vmem:[#allocation5] sm:$0xff]   ;;  %v578_v14 = vld [vmem:[#allocation7 + $0x10] sm:$0xff]  }
  0x38   :  { %v81_v15 = vld [vmem:[#allocation2] sm:$0xf]  ;;  %v579_v16 = vld [vmem:[#allocation7 + $0x8] sm:$0xff]   ;;  %v580_v17 = vld [vmem:[#allocation7] sm:$0xff]  }
  0x39   :  { %v581_v18 = vld [vmem:[#allocation8 + $0x38] sm:$0xff]   ;;  %v582_v19 = vld [vmem:[#allocation8 + $0x30] sm:$0xff]   ;;  %v583_v20 = vld [vmem:[#allocation8 + $0x28] sm:$0xff]  }
  0x3a   :  { %499 = vmatpush3.bf16.msra.mxu0 %v566_v2  ;;  %519 = vmatpush3.bf16.msra.mxu1 %v574_v6  ;;  %v584_v21 = vld [vmem:[#allocation8 + $0x20] sm:$0xff]   ;;  %v585_v22 = vld [vmem:[#allocation8 + $0x18] sm:$0xff]   ;;  %v586_v23 = vld [vmem:[#allocation8 + $0x10] sm:$0xff]  }
  0x3b   :  { %500 = vmatprep.subr.bf16.mxu0 %v707_v0  ;;  %520 = vmatprep.subr.bf16.mxu1 %v707_v0  ;;  %v442_v24 = vld [vmem:[%s815_s2] ss:$0 sm:$0xff]  ;;  %v587_v32 = vld [vmem:[#allocation8 + $0x8] sm:$0xff]   ;;  %v588_v33 = vld [vmem:[#allocation8] sm:$0xff]  }
  0x3c   :  { %v451_v34 = vld [vmem:[%s817_s4] ss:$0 sm:$0xff]  ;;  %s709_s4 = smov [#allocation10]  }
  0x3d   :  { %v460_v42 = vld [vmem:[%s819_s6] ss:$0 sm:$0xff]  ;;  %s431_s24 = sshll.u32 %s709_s4, 4  ;;  %s432_s24 = int_to_ptr.vmem [resolvable:$true] %s431_s24 }
  0x3e   :  { %501 = vmatpush3.bf16.msra.mxu0 %v567_v3  ;;  %521 = vmatpush3.bf16.msra.mxu1 %v575_v8  ;;  %s673_s25 = scalar_lea.vmem %s432_s24, 128  ;;  %p678_p7 = scmp.lt.s32.totalorder %s432_s24, %s432_s24 }
  0x3f   :  { %502 = vmatprep.subr.bf16.mxu0 %v707_v0  ;;  %522 = vmatprep.subr.bf16.mxu1 %v707_v0  ;;  %p674_p6 = scmp.ne.s32.totalorder %s432_s24, %s673_s25  ;;  %p679_p8 = scmp.lt.s32.totalorder %s673_s25, %s673_s25 }
  0x41   :  { %p680_p9 = por %p679_p8, %p678_p7 }
  0x42   :  { %503 = vmatpush3.bf16.msra.mxu0 %v568_v5  ;;  %523 = vmatpush3.bf16.msra.mxu1 %v576_v10 }
  0x43   :  { %504 = vmatprep.subr.bf16.mxu0 %v707_v0  ;;  %524 = vmatprep.subr.bf16.mxu1 %v707_v0  ;;  %p681_p10 = pnand %p680_p9, %p674_p6 }
  0x46   :  { %505 = vmatpush3.bf16.msra.mxu0 %v569_v7  ;;  %525 = vmatpush3.bf16.msra.mxu1 %v577_v12 }
  0x47   :  { %506 = vmatprep.subr.bf16.mxu0 %v707_v0  ;;  %526 = vmatprep.subr.bf16.mxu1 %v707_v0 }
  0x4a   :  { %507 = vmatpush3.bf16.msra.mxu0 %v570_v9  ;;  %527 = vmatpush3.bf16.msra.mxu1 %v578_v14 }
  0x4b   :  { %508 = vmatprep.subr.bf16.mxu0 %v707_v0  ;;  %528 = vmatprep.subr.bf16.mxu1 %v707_v0 }
  0x4e   :  { %509 = vmatpush3.bf16.msra.mxu0 %v571_v11  ;;  %529 = vmatpush3.bf16.msra.mxu1 %v579_v16 }
  0x4f   :  { %510 = vmatprep.subr.bf16.mxu0 %v707_v0  ;;  %530 = vmatprep.subr.bf16.mxu1 %v707_v0 }
  0x52   :  { %511 = vmatpush3.bf16.msra.mxu0 %v572_v13  ;;  %531 = vmatpush3.bf16.msra.mxu1 %v580_v17 }
  0x53   :  { %536 = vmatprep.subr.bf16.mxu0 %v707_v0 }
  0x55   :  { %513 = vmatmul.mubr.bf16.vlgmr.msra.gmra.mxu0 %v81_v15 }
  0x56   :  { %552 = vmatprep.mubr.msk.bf16.mxu0 %vm708_vm0, %v707_v0  ;;  %537 = vmatpush3.bf16.msra.mxu0 %v581_v18 }
  0x57   :  { %538 = vmatprep.subr.bf16.mxu0 %v707_v0 }
  0x5a   :  { %539 = vmatpush3.bf16.msra.mxu0 %v582_v19 }
  0x5b   :  { %540 = vmatprep.subr.bf16.mxu0 %v707_v0 }
  0x5e   :  { %541 = vmatpush3.bf16.msra.mxu0 %v583_v20 }
  0x5f   :  { %542 = vmatprep.subr.bf16.mxu0 %v707_v0 }
  0x62   :  { %543 = vmatpush3.bf16.msra.mxu0 %v584_v21 }
  0x63   :  { %544 = vmatprep.subr.bf16.mxu0 %v707_v0 }
  0x66   :  { %545 = vmatpush3.bf16.msra.mxu0 %v585_v22 }
  0x67   :  { %546 = vmatprep.subr.bf16.mxu0 %v707_v0 }
  0x6a   :  { %547 = vmatpush3.bf16.msra.mxu0 %v586_v23 }
  0x6b   :  { %548 = vmatprep.subr.bf16.mxu0 %v707_v0 }
  0x6e   :  { %549 = vmatpush3.bf16.msra.mxu0 %v587_v32 }
  0x6f   :  { %550 = vmatprep.subr.bf16.mxu0 %v707_v0 }
  0x72   :  { %551 = vmatpush3.bf16.msra.mxu0 %v588_v33 }
 0x115   :  { %v187_v25 = vpop.f32.mrf.mxu0 }
 0x116   :  { %v188_v26 = vadd.f32 %v442_v24, %v187_v25 }
 0x117   :  { %v514_v27 = vpop.f32.mrf.mxu0 }
 0x118   :  { %v193_v28 = vmax.f32 %v188_v26, 0.0 }
 0x119   :  { %v190_v29 = vpop.f32.mrf.mxu0 }
 0x11a   :  { %v194_v30 = vpack.c.bf16 %v193_v28, %v193_v28 }
 0x11b   :  { %v515_v31 = vpop.f32.mrf.mxu0 }
 0x11c   :  { %533 = vmatmul.mubr.bf16.vlgmr.msra.gmra.mxu1 %v194_v30 }
 0x1dc   :  { %v300_v35 = vpop.f32.mrf.mxu1 }
 0x1dd   :  { %v301_v36 = vadd.f32 %v451_v34, %v300_v35 }
 0x1de   :  { %v534_v37 = vpop.f32.mrf.mxu1 }
 0x1df   :  { %v306_v38 = vmax.f32 %v301_v36, 0.0 }
 0x1e0   :  { %v303_v39 = vpop.f32.mrf.mxu1 }
 0x1e1   :  { %v307_v40 = vpack.c.bf16 %v306_v38, %v306_v38 }
 0x1e2   :  { %v535_v41 = vpop.f32.mrf.mxu1 }
 0x1e3   :  { %553 = vmatmul.mubr.bf16.vlgmr.msra.gmra.mxu0 %v307_v40 }
 0x2a3   :  { %v413_v43 = vpop.f32.mrf.mxu0 }
 0x2a4   :  { %v414_v44 = vadd.f32 %v460_v42, %v413_v43 }
 0x2a5   :  { %v554_v45 = vpop.f32.mrf.mxu0 }
 0x2a6   :  { %v419_v46 = vsub.f32 0.0, %v414_v44 }
 0x2a7   :  { %v416_v47 = vpop.f32.mrf.mxu0 }
 0x2a8   :  { %v420_v48 = vmul.f32 1.442695, %v419_v46 }
 0x2a9   :  { %v555_v49 = vpop.f32.mrf.mxu0 }
 0x2aa   :  { %589 = vpow2.f32 %v420_v48 }
 0x2b7   :  { %v590_v50 = vpop.eup %589 }
 0x2b8   :  { %v422_v51 = vadd.f32 1.0, %v590_v50 }
 0x2ba   :  { %591 = vrcp.f32 %v422_v51 }
 0x2c7   :  { %v592_v52 = vpop.eup %591 }
 0x2c8   :  { %424 = vst [vmem:[#allocation10] sm:$0xff] %v592_v52 }
 0x2c9   :  { %684 = shalt.err (!%p681_p10)
}
 0x2ca   :  { %434 = dma.vmem_to_hbm [thread:$0]  %s432_s24, 128, %s820_s7, [#allocation4]  }
 0x2cb   :  { %699 = dma.done.wait [#allocation4], 128  }
 0x2cc   :  { %700 = vsyncadd [#allocation4], 4294967168 }
 0x2cd   :  { %438 = vsyncpa [#allocation3], 1 }
 0x2ce   :  { %439 = vsyncpa [#allocation6], 1 }
 0x2cf   :  { %440 = vsyncpa [#allocation9], 1 }
 0x2d0   :  { %441 = vsyncpa [#allocation4], 1 }

// kernel: tpu_custom_call.1
= control target key start
LH: loop header
LB: loop body
LE: loop exit
PB: predicated region body
PF: predicated region fallthrough
CT: control target
= control target key end

     0   :  { %12 = vsyncpa [#allocation3], 0  ;;  %s813_s0 = inlined_call_operand.hbm [shape: bf16[8,128], index: 0, kind: input, shape index: {}]   ;;  %s814_s1 = inlined_call_operand.hbm [shape: bf16[128,128], index: 1, kind: input, shape index: {}]   ;;  %s815_s2 = inlined_call_operand.vmem [shape: f32[1,128], index: 2, kind: input, shape index: {}]   ;;  %s816_s3 = inlined_call_operand.hbm [shape: bf16[128,128], index: 3, kind: input, shape index: {}]   ;;  %s817_s4 = inlined_call_operand.vmem [shape: f32[1,128], index: 4, kind: input, shape index: {}]   ;;  %s818_s5 = inlined_call_operand.hbm [shape: bf16[128,128], index: 5, kind: input, shape index: {}]   ;;  %s819_s6 = inlined_call_operand.vmem [shape: f32[1,128], index: 6, kind: input, shape index: {}]   ;;  %s820_s7 = inlined_call_operand.hbm [shape: f32[8,128], index: 7, kind: output, shape index: {}]  }
   0x1   :  { %13 = vsyncpa [#allocation6], 0 }
   0x2   :  { %14 = vsyncpa [#allocation9], 0 }
   0x3   :  { %15 = vsyncpa [#allocation4], 0  ;;  %s701_s24 = smov [#allocation5]  }
   0x4   :  { %s31_s25 = sshll.u32 %s701_s24, 4  ;;  %s32_s25 = int_to_ptr.vmem [resolvable:$true] %s31_s25 }
   0x5   :  { %s601_s26 = scalar_lea.vmem %s32_s25, 1024  ;;  %p606_p1 = scmp.lt.s32.totalorder %s32_s25, %s32_s25 }
   0x6   :  { %p602_p0 = scmp.ne.s32.totalorder %s32_s25, %s601_s26  ;;  %p607_p2 = scmp.lt.s32.totalorder %s601_s26, %s601_s26 }
   0x8   :  { %p608_p3 = por %p607_p2, %p606_p1 }
   0xa   :  { %p609_p4 = pnand %p608_p3, %p602_p0 }
   0xc   :  { %612 = shalt.err (!%p609_p4)
}
   0xd   :  { %s702_s27 = smov 64   ;;  %s703_s28 = smov 4  }
   0xe   :  { %37 = dma.hbm_to_vmem [thread:$0]  %s814_s1, 1024, %s32_s25, [#allocation6], %s702_s27, %s702_s27, %s703_s28  }
   0xf   :  { %s704_s8 = smov [#allocation2]   ;;  %s705_s10 = smov [#allocation7]  }
  0x10   :  { %s22_s9 = sshll.u32 %s704_s8, 4  ;;  %s45_s11 = sshll.u32 %s705_s10, 4  ;;  %s23_s9 = int_to_ptr.vmem [resolvable:$true] %s22_s9  ;;  %s46_s11 = int_to_ptr.vmem [resolvable:$true] %s45_s11 }
  0x11   :  { %s621_s12 = scalar_lea.vmem %s23_s9, 64  ;;  %p626_p6 = scmp.lt.s32.totalorder %s23_s9, %s23_s9 }
  0x12   :  { %p622_p5 = scmp.ne.s32.totalorder %s23_s9, %s621_s12  ;;  %p627_p7 = scmp.lt.s32.totalorder %s621_s12, %s621_s12 }
  0x14   :  { %p628_p8 = por %p627_p7, %p626_p6 }
  0x16   :  { %p629_p9 = pnand %p628_p8, %p622_p5 }
  0x18   :  { %632 = shalt.err (!%p629_p9)
}
  0x19   :  { %25 = dma.hbm_to_vmem [thread:$0]  %s813_s0, 64, %s23_s9, [#allocation3]  }
  0x1a   :  { %s641_s15 = scalar_lea.vmem %s46_s11, 1024  ;;  %p646_p11 = scmp.lt.s32.totalorder %s46_s11, %s46_s11 }
  0x1b   :  { %p642_p10 = scmp.ne.s32.totalorder %s46_s11, %s641_s15  ;;  %p647_p12 = scmp.lt.s32.totalorder %s641_s15, %s641_s15 }
  0x1d   :  { %p648_p13 = por %p647_p12, %p646_p11 }
  0x1f   :  { %p649_p0 = pnand %p648_p13, %p642_p10 }
  0x21   :  { %652 = shalt.err (!%p649_p0)
}
  0x22   :  { %51 = dma.hbm_to_vmem [thread:$0]  %s816_s3, 1024, %s46_s11, [#allocation6], %s702_s27, %s702_s27, %s703_s28  }
  0x23   :  { %s706_s17 = smov [#allocation8]  }
  0x24   :  { %s59_s18 = sshll.u32 %s706_s17, 4  ;;  %s60_s18 = int_to_ptr.vmem [resolvable:$true] %s59_s18 }
  0x25   :  { %s661_s19 = scalar_lea.vmem %s60_s18, 1024  ;;  %p666_p2 = scmp.lt.s32.totalorder %s60_s18, %s60_s18 }
  0x26   :  { %p662_p1 = scmp.ne.s32.totalorder %s60_s18, %s661_s19  ;;  %p667_p3 = scmp.lt.s32.totalorder %s661_s19, %s661_s19 }
  0x28   :  { %p668_p4 = por %p667_p3, %p666_p2 }
  0x2a   :  { %p669_p5 = pnand %p668_p4, %p662_p1 }
  0x2c   :  { %672 = shalt.err (!%p669_p5)
}
  0x2d   :  { %65 = dma.hbm_to_vmem [thread:$0]  %s818_s5, 1024, %s60_s18, [#allocation9], %s702_s27, %s702_s27, %s703_s28  }
  0x2e   :  { %693 = dma.done.wait [#allocation3], 64  }
  0x2f   :  { %694 = vsyncadd [#allocation3], 4294967232 }
  0x30   :  { %695 = dma.done.wait [#allocation6], 2048  }
  0x31   :  { %696 = vsyncadd [#allocation6], 4294965248 }
  0x32   :  { %697 = dma.done.wait [#allocation9], 1024  }
  0x33   :  { %698 = vsyncadd [#allocation9], 4294966272  ;;  %v707_v0 = vmov 0.0   ;;  %vm708_vm0 = vmmov 0   ;;  %v565_v1 = vld [vmem:[#allocation5 + $0x38] sm:$0xff]   ;;  %v566_v2 = vld [vmem:[#allocation5 + $0x30] sm:$0xff]  }
  0x34   :  { %496 = vmatprep.subr.bf16.mxu0 %v707_v0  ;;  %512 = vmatprep.mubr.msk.bf16.mxu0 %vm708_vm0, %v707_v0  ;;  %v567_v3 = vld [vmem:[#allocation5 + $0x28] sm:$0xff]   ;;  %v573_v4 = vld [vmem:[#allocation7 + $0x38] sm:$0xff]   ;;  %v568_v5 = vld [vmem:[#allocation5 + $0x20] sm:$0xff]  }
  0x35   :  { %516 = vmatprep.subr.bf16.mxu1 %v707_v0  ;;  %532 = vmatprep.mubr.msk.bf16.mxu1 %vm708_vm0, %v707_v0  ;;  %v574_v6 = vld [vmem:[#allocation7 + $0x30] sm:$0xff]   ;;  %v569_v7 = vld [vmem:[#allocation5 + $0x18] sm:$0xff]   ;;  %v575_v8 = vld [vmem:[#allocation7 + $0x28] sm:$0xff]  }
  0x36   :  { %497 = vmatpush3.bf16.msra.mxu0 %v565_v1  ;;  %517 = vmatpush3.bf16.msra.mxu1 %v573_v4  ;;  %v570_v9 = vld [vmem:[#allocation5 + $0x10] sm:$0xff]   ;;  %v576_v10 = vld [vmem:[#allocation7 + $0x20] sm:$0xff]   ;;  %v571_v11 = vld [vmem:[#allocation5 + $0x8] sm:$0xff]  }
  0x37   :  { %498 = vmatprep.subr.bf16.mxu0 %v707_v0  ;;  %518 = vmatprep.subr.bf16.mxu1 %v707_v0  ;;  %v577_v12 = vld [vmem:[#allocation7 + $0x18] sm:$0xff]   ;;  %v572_v13 = vld [vmem:[#allocation5] sm:$0xff]   ;;  %v578_v14 = vld [vmem:[#allocation7 + $0x10] sm:$0xff]  }
  0x38   :  { %v81_v15 = vld [vmem:[#allocation2] sm:$0xf]  ;;  %v579_v16 = vld [vmem:[#allocation7 + $0x8] sm:$0xff]   ;;  %v580_v17 = vld [vmem:[#allocation7] sm:$0xff]  }
  0x39   :  { %v581_v18 = vld [vmem:[#allocation8 + $0x38] sm:$0xff]   ;;  %v582_v19 = vld [vmem:[#allocation8 + $0x30] sm:$0xff]   ;;  %v583_v20 = vld [vmem:[#allocation8 + $0x28] sm:$0xff]  }
  0x3a   :  { %499 = vmatpush3.bf16.msra.mxu0 %v566_v2  ;;  %519 = vmatpush3.bf16.msra.mxu1 %v574_v6  ;;  %v584_v21 = vld [vmem:[#allocation8 + $0x20] sm:$0xff]   ;;  %v585_v22 = vld [vmem:[#allocation8 + $0x18] sm:$0xff]   ;;  %v586_v23 = vld [vmem:[#allocation8 + $0x10] sm:$0xff]  }
  0x3b   :  { %500 = vmatprep.subr.bf16.mxu0 %v707_v0  ;;  %520 = vmatprep.subr.bf16.mxu1 %v707_v0  ;;  %v442_v24 = vld [vmem:[%s815_s2] ss:$0 sm:$0xff]  ;;  %v587_v32 = vld [vmem:[#allocation8 + $0x8] sm:$0xff]   ;;  %v588_v33 = vld [vmem:[#allocation8] sm:$0xff]  }
  0x3c   :  { %v451_v34 = vld [vmem:[%s817_s4] ss:$0 sm:$0xff]  ;;  %s709_s4 = smov [#allocation10]  }
  0x3d   :  { %v460_v42 = vld [vmem:[%s819_s6] ss:$0 sm:$0xff]  ;;  %s431_s24 = sshll.u32 %s709_s4, 4  ;;  %s432_s24 = int_to_ptr.vmem [resolvable:$true] %s431_s24 }
  0x3e   :  { %501 = vmatpush3.bf16.msra.mxu0 %v567_v3  ;;  %521 = vmatpush3.bf16.msra.mxu1 %v575_v8  ;;  %s673_s25 = scalar_lea.vmem %s432_s24, 128  ;;  %p678_p7 = scmp.lt.s32.totalorder %s432_s24, %s432_s24 }
  0x3f   :  { %502 = vmatprep.subr.bf16.mxu0 %v707_v0  ;;  %522 = vmatprep.subr.bf16.mxu1 %v707_v0  ;;  %p674_p6 = scmp.ne.s32.totalorder %s432_s24, %s673_s25  ;;  %p679_p8 = scmp.lt.s32.totalorder %s673_s25, %s673_s25 }
  0x41   :  { %p680_p9 = por %p679_p8, %p678_p7 }
  0x42   :  { %503 = vmatpush3.bf16.msra.mxu0 %v568_v5  ;;  %523 = vmatpush3.bf16.msra.mxu1 %v576_v10 }
  0x43   :  { %504 = vmatprep.subr.bf16.mxu0 %v707_v0  ;;  %524 = vmatprep.subr.bf16.mxu1 %v707_v0  ;;  %p681_p10 = pnand %p680_p9, %p674_p6 }
  0x46   :  { %505 = vmatpush3.bf16.msra.mxu0 %v569_v7  ;;  %525 = vmatpush3.bf16.msra.mxu1 %v577_v12 }
  0x47   :  { %506 = vmatprep.subr.bf16.mxu0 %v707_v0  ;;  %526 = vmatprep.subr.bf16.mxu1 %v707_v0 }
  0x4a   :  { %507 = vmatpush3.bf16.msra.mxu0 %v570_v9  ;;  %527 = vmatpush3.bf16.msra.mxu1 %v578_v14 }
  0x4b   :  { %508 = vmatprep.subr.bf16.mxu0 %v707_v0  ;;  %528 = vmatprep.subr.bf16.mxu1 %v707_v0 }
  0x4e   :  { %509 = vmatpush3.bf16.msra.mxu0 %v571_v11  ;;  %529 = vmatpush3.bf16.msra.mxu1 %v579_v16 }
  0x4f   :  { %510 = vmatprep.subr.bf16.mxu0 %v707_v0  ;;  %530 = vmatprep.subr.bf16.mxu1 %v707_v0 }
  0x52   :  { %511 = vmatpush3.bf16.msra.mxu0 %v572_v13  ;;  %531 = vmatpush3.bf16.msra.mxu1 %v580_v17 }
  0x53   :  { %536 = vmatprep.subr.bf16.mxu0 %v707_v0 }
  0x55   :  { %513 = vmatmul.mubr.bf16.vlgmr.msra.gmra.mxu0 %v81_v15 }
  0x56   :  { %552 = vmatprep.mubr.msk.bf16.mxu0 %vm708_vm0, %v707_v0  ;;  %537 = vmatpush3.bf16.msra.mxu0 %v581_v18 }
  0x57   :  { %538 = vmatprep.subr.bf16.mxu0 %v707_v0 }
  0x5a   :  { %539 = vmatpush3.bf16.msra.mxu0 %v582_v19 }
  0x5b   :  { %540 = vmatprep.subr.bf16.mxu0 %v707_v0 }
  0x5e   :  { %541 = vmatpush3.bf16.msra.mxu0 %v583_v20 }
  0x5f   :  { %542 = vmatprep.subr.bf16.mxu0 %v707_v0 }
  0x62   :  { %543 = vmatpush3.bf16.msra.mxu0 %v584_v21 }
  0x63   :  { %544 = vmatprep.subr.bf16.mxu0 %v707_v0 }
  0x66   :  { %545 = vmatpush3.bf16.msra.mxu0 %v585_v22 }
  0x67   :  { %546 = vmatprep.subr.bf16.mxu0 %v707_v0 }
  0x6a   :  { %547 = vmatpush3.bf16.msra.mxu0 %v586_v23 }
  0x6b   :  { %548 = vmatprep.subr.bf16.mxu0 %v707_v0 }
  0x6e   :  { %549 = vmatpush3.bf16.msra.mxu0 %v587_v32 }
  0x6f   :  { %550 = vmatprep.subr.bf16.mxu0 %v707_v0 }
  0x72   :  { %551 = vmatpush3.bf16.msra.mxu0 %v588_v33 }
 0x115   :  { %v187_v25 = vpop.f32.mrf.mxu0 }
 0x116   :  { %v188_v26 = vadd.f32 %v442_v24, %v187_v25 }
 0x117   :  { %v514_v27 = vpop.f32.mrf.mxu0 }
 0x118   :  { %v193_v28 = vmax.f32 %v188_v26, 0.0 }
 0x119   :  { %v190_v29 = vpop.f32.mrf.mxu0 }
 0x11a   :  { %v194_v30 = vpack.c.bf16 %v193_v28, %v193_v28 }
 0x11b   :  { %v515_v31 = vpop.f32.mrf.mxu0 }
 0x11c   :  { %533 = vmatmul.mubr.bf16.vlgmr.msra.gmra.mxu1 %v194_v30 }
 0x1dc   :  { %v300_v35 = vpop.f32.mrf.mxu1 }
 0x1dd   :  { %v301_v36 = vadd.f32 %v451_v34, %v300_v35 }
 0x1de   :  { %v534_v37 = vpop.f32.mrf.mxu1 }
 0x1df   :  { %v306_v38 = vmax.f32 %v301_v36, 0.0 }
 0x1e0   :  { %v303_v39 = vpop.f32.mrf.mxu1 }
 0x1e1   :  { %v307_v40 = vpack.c.bf16 %v306_v38, %v306_v38 }
 0x1e2   :  { %v535_v41 = vpop.f32.mrf.mxu1 }
 0x1e3   :  { %553 = vmatmul.mubr.bf16.vlgmr.msra.gmra.mxu0 %v307_v40 }
 0x2a3   :  { %v413_v43 = vpop.f32.mrf.mxu0 }
 0x2a4   :  { %v414_v44 = vadd.f32 %v460_v42, %v413_v43 }
 0x2a5   :  { %v554_v45 = vpop.f32.mrf.mxu0 }
 0x2a6   :  { %v419_v46 = vsub.f32 0.0, %v414_v44 }
 0x2a7   :  { %v416_v47 = vpop.f32.mrf.mxu0 }
 0x2a8   :  { %v420_v48 = vmul.f32 1.442695, %v419_v46 }
 0x2a9   :  { %v555_v49 = vpop.f32.mrf.mxu0 }
 0x2aa   :  { %589 = vpow2.f32 %v420_v48 }
 0x2b7   :  { %v590_v50 = vpop.eup %589 }
 0x2b8   :  { %v422_v51 = vadd.f32 1.0, %v590_v50 }
 0x2ba   :  { %591 = vrcp.f32 %v422_v51 }
 0x2c7   :  { %v592_v52 = vpop.eup %591 }
 0x2c8   :  { %424 = vst [vmem:[#allocation10] sm:$0xff] %v592_v52 }
 0x2c9   :  { %684 = shalt.err (!%p681_p10)
}
 0x2ca   :  { %434 = dma.vmem_to_hbm [thread:$0]  %s432_s24, 128, %s820_s7, [#allocation4]  }
 0x2cb   :  { %699 = dma.done.wait [#allocation4], 128  }
 0x2cc   :  { %700 = vsyncadd [#allocation4], 4294967168 }
 0x2cd   :  { %438 = vsyncpa [#allocation3], 1 }
 0x2ce   :  { %439 = vsyncpa [#allocation6], 1 }
 0x2cf   :  { %440 = vsyncpa [#allocation9], 1 }
 0x2d0   :  { %441 = vsyncpa [#allocation4], 1 }

</bundles_post_ra>
